<compile_context>
chip_gen: v6e
topology: v6e:2x2x1
jax: 0.10.0
libtpu: 0.0.40
codegen_flags: <defaults>
</compile_context>

<pallas_src>
import functools

import jax
import jax.numpy as jnp
from jax.experimental import pallas as pl
from jax.experimental.pallas import tpu as pltpu

HIDDEN = 64
W2_ROWS = 8  # fc3 weight row-padded to one full sublane group (row 0 is real)


def _round_up(x, m):
    return (x + m - 1) // m * m


def _critic_kernel(x_ref, w1_ref, b1_ref, w2_ref, b2_ref, out_ref, *, feature_major):
    # x_ref  : (TB, D) or (D, TB)  state tile
    # w1_ref : (H, D)              fc1 weight, PyTorch (out, in) layout
    # b1_ref : (H, 1)              fc1 bias as a column (f32)
    # w2_ref : (8, H)              fc3 weight, row 0 real, rows 1..7 zero (f32)
    # b2_ref : (1, 1)              fc3 bias (f32)
    # out_ref: (1, TB)             lane-dense output row
    x = x_ref[...]
    w1 = w1_ref[...]
    if x.dtype != w1.dtype:  # mixed dtypes: fall back to f32 for the MXU feed
        x = x.astype(jnp.float32)
        w1 = w1.astype(jnp.float32)

    # fc1 transposed so the batch lands on lanes: h_t[h, t] = sum_d w1[h, d] * x[d at t]
    if feature_major:
        dims = (((1,), (0,)), ((), ()))   # (H, D) @ (D, TB)
    else:
        dims = (((1,), (1,)), ((), ()))   # (H, D) x (TB, D), contracted on D
    h_t = jax.lax.dot_general(w1, x, dims, preferred_element_type=jnp.float32)  # (H, TB) f32
    h_t = jnp.maximum(h_t + b1_ref[...], 0.0)  # bias + ReLU on the VPU

    # fc3 on the MXU: (8, H) @ (H, TB) -> (8, TB); keep only the real row 0.
    y = jax.lax.dot_general(w2_ref[...], h_t, (((1,), (0,)), ((), ())),
                            preferred_element_type=jnp.float32)
    out_ref[...] = (y[0:1, :] + b2_ref[...]).astype(out_ref.dtype)


@functools.partial(jax.jit, static_argnames=("block_batch", "feature_major"))
def critic_forward(state, w1, b1, w2, b2, *, block_batch=8192, feature_major=False):
    """Critic forward: ReLU(state @ w1.T + b1) @ w2.T + b2 -> (B, 1).

    Weights are in PyTorch layout: w1 (64, D), b1 (64,), w2 (1, 64), b2 (1,).
    `state` is (B, D) by default; pass `feature_major=True` if the producer
    already stores it as (D, B) (avoids lane-padding the tiny feature dim).
    `state`/`w1` may arrive in bf16 (no wrapper cast); accumulation stays f32.
    """
    if feature_major:
        D, B = state.shape
    else:
        B, D = state.shape
    H = w1.shape[0]
    assert H == HIDDEN and w2.shape == (1, H)

    # Batch tile: lane-aligned, big enough to amortize the ~0.35us per-step
    # overhead, and >= 2 grid steps for moderate/large B (v7x megacore).
    tb_cap = max(128, _round_up(block_batch, 128))
    if B <= 256:
        tb = max(128, _round_up(B, 128))
    else:
        tb = min(_round_up(-(-B // 2), 128), tb_cap)
    grid = (pl.cdiv(B, tb),)   # ragged tail handled by Pallas edge-block clipping

    # Tiny parameter reshapes only (no full passes over `state`).
    b1_p = b1.reshape(H, 1).astype(jnp.float32)
    w2_p = jnp.pad(w2.astype(jnp.float32), ((0, W2_ROWS - 1), (0, 0)))  # (8, H)
    b2_p = b2.reshape(1, 1).astype(jnp.float32)

    if feature_major:
        x_spec = pl.BlockSpec((D, tb), lambda i: (0, i))
        x_tile_bytes = _round_up(D, 8) * _round_up(tb, 128) * state.dtype.itemsize
    else:
        x_spec = pl.BlockSpec((tb, D), lambda i: (i, 0))
        x_tile_bytes = _round_up(tb, 8) * _round_up(D, 128) * state.dtype.itemsize

    # VMEM budget: double-buffered x + out, hidden intermediate, resident params.
    h_tile_bytes = H * _round_up(tb, 128) * 4
    out_tile_bytes = 8 * _round_up(tb, 128) * 4
    w_bytes = (_round_up(H, 8) * _round_up(D, 128) * w1.dtype.itemsize
               + (H + W2_ROWS + 8) * 128 * 4)
    need = 2 * x_tile_bytes + 2 * out_tile_bytes + 2 * h_tile_bytes + 2 * w_bytes
    vmem_limit = int(min(max(2 * need, 32 << 20), 48 << 20))

    cost = pl.CostEstimate(
        flops=2 * B * D * H + 4 * B * H,
        transcendentals=0,
        bytes_accessed=(B * D * state.dtype.itemsize + B * 4
                        + H * D * w1.dtype.itemsize
                        + (2 * H + W2_ROWS * H + 1) * 4),
    )

    kernel = functools.partial(_critic_kernel, feature_major=feature_major)
    out = pl.pallas_call(
        kernel,
        out_shape=jax.ShapeDtypeStruct((1, B), jnp.float32),
        grid_spec=pltpu.PrefetchScalarGridSpec(
            num_scalar_prefetch=0,
            grid=grid,
            in_specs=[
                x_spec,                                         # state tile (pipelined)
                pl.BlockSpec((H, D), lambda i: (0, 0)),         # w1: VMEM-resident
                pl.BlockSpec((H, 1), lambda i: (0, 0)),         # b1: VMEM-resident
                pl.BlockSpec((W2_ROWS, H), lambda i: (0, 0)),   # w2 (row-padded): resident
                pl.BlockSpec((1, 1), lambda i: (0, 0)),         # b2: VMEM-resident
            ],
            out_specs=pl.BlockSpec((1, tb), lambda i: (0, i)),  # lane-dense output row
        ),
        compiler_params=pltpu.CompilerParams(
            dimension_semantics=("parallel",),  # shard batch tiles across TCs (v7x)
            vmem_limit_bytes=vmem_limit,
        ),
        cost_estimate=cost,
    )(state, w1, b1_p, w2_p, b2_p)

    return out.reshape(B, 1)


def init_critic_params(key, input_size, hidden=HIDDEN):
    """nn.Linear-style init (U[-1/sqrt(fan_in), 1/sqrt(fan_in)]), PyTorch layouts."""
    k1, k2, k3, k4 = jax.random.split(key, 4)
    bnd1 = 1.0 / (input_size ** 0.5)
    bnd2 = 1.0 / (hidden ** 0.5)
    w1 = jax.random.uniform(k1, (hidden, input_size), jnp.float32, -bnd1, bnd1)
    b1 = jax.random.uniform(k2, (hidden,), jnp.float32, -bnd1, bnd1)
    w2 = jax.random.uniform(k3, (1, hidden), jnp.float32, -bnd2, bnd2)
    b2 = jax.random.uniform(k4, (1,), jnp.float32, -bnd2, bnd2)
    return w1, b1, w2, b2


def _reference(state, w1, b1, w2, b2):
    hp = jax.lax.Precision.HIGHEST
    h = jnp.maximum(jnp.dot(state, w1.T, precision=hp) + b1, 0.0)
    return jnp.dot(h, w2.T, precision=hp) + b2


if __name__ == "__main__":
    key = jax.random.PRNGKey(0)
    k_params, k_state, k_state2 = jax.random.split(key, 3)

    batch = 2
    input_size = 8  # typical small RL state vector

    w1, b1, w2, b2 = init_critic_params(k_params, input_size)
    state = jax.random.normal(k_state, (batch, input_size), jnp.float32)

    # Small-batch (single tile) run.
    out = jax.block_until_ready(critic_forward(state, w1, b1, w2, b2))
    ref = _reference(state, w1, b1, w2, b2)
    assert out.shape == (batch, 1)
    assert jnp.allclose(out, ref, atol=1e-4, rtol=1e-4)

    # Multi-tile grid with a ragged tail (no wrapper-side padding of the batch).
    batch2 = 3000
    state2 = jax.random.normal(k_state2, (batch2, input_size), jnp.float32)
    out2 = jax.block_until_ready(
        critic_forward(state2, w1, b1, w2, b2, block_batch=1024))
    ref2 = _reference(state2, w1, b1, w2, b2)
    assert out2.shape == (batch2, 1)
    assert jnp.allclose(out2, ref2, atol=1e-4, rtol=1e-4)

    # Feature-major producer layout ((D, B) state): no lane-padding of the tiny D.
    out_fm = jax.block_until_ready(
        critic_forward(state2.T, w1, b1, w2, b2, block_batch=1024,
                       feature_major=True))
    assert out_fm.shape == (batch2, 1)
    assert jnp.allclose(out_fm, ref2, atol=1e-4, rtol=1e-4)

    # Caller-provided bf16 state / w1 (no wrapper-side cast); f32 accumulation.
    state2_bf = state2.astype(jnp.bfloat16)
    w1_bf = w1.astype(jnp.bfloat16)
    out_bf = jax.block_until_ready(
        critic_forward(state2_bf, w1_bf, b1, w2, b2, block_batch=1024))
    ref_bf = _reference(state2_bf.astype(jnp.float32), w1_bf.astype(jnp.float32),
                        b1, w2, b2)
    assert jnp.allclose(out_bf, ref_bf, atol=1e-4, rtol=1e-4)

    print("KERNEL_OK")
</pallas_src>

<mosaic_0001>
module attributes {stable_mosaic.version = 11 : i64} {
  func.func @_critic_kernel(%arg0: i32, %arg1: memref<128x8xf32, #tpu.memory_space<vmem>>, %arg2: memref<64x8xf32, #tpu.memory_space<vmem>>, %arg3: memref<64x1xf32, #tpu.memory_space<vmem>>, %arg4: memref<8x64xf32, #tpu.memory_space<vmem>>, %arg5: memref<1x1xf32, #tpu.memory_space<vmem>>, %arg6: memref<1x128xf32, #tpu.memory_space<vmem>>) attributes {dimension_semantics = [#tpu.dimension_semantics<parallel>], iteration_bounds = array<i64: 1>, scalar_prefetch = 0 : i64, scratch_operands = 0 : i64, tpu.core_type = #tpu.core_type<tc>, window_params = [{transform_indices = @transform_0, window_bounds = array<i64: 128, 8>}, {pipeline_mode = #tpu.pipeline_mode<synchronous>, transform_indices = @transform_1, window_bounds = array<i64: 64, 8>}, {pipeline_mode = #tpu.pipeline_mode<synchronous>, transform_indices = @transform_2, window_bounds = array<i64: 64, 1>}, {pipeline_mode = #tpu.pipeline_mode<synchronous>, transform_indices = @transform_3, window_bounds = array<i64: 8, 64>}, {pipeline_mode = #tpu.pipeline_mode<synchronous>, transform_indices = @transform_4, window_bounds = array<i64: 1, 1>}, {transform_indices = @transform_5, window_bounds = array<i64: 1, 128>}]} {
    %c0 = arith.constant 0 : index
    %c0_0 = arith.constant 0 : index
    %0 = vector.load %arg1[%c0, %c0_0] : memref<128x8xf32, #tpu.memory_space<vmem>>, vector<128x8xf32>
    %c0_1 = arith.constant 0 : index
    %c0_2 = arith.constant 0 : index
    %1 = vector.load %arg2[%c0_1, %c0_2] : memref<64x8xf32, #tpu.memory_space<vmem>>, vector<64x8xf32>
    %cst = arith.constant dense<0.000000e+00> : vector<64x128xf32>
    %2 = tpu.matmul %1, %0, %cst {dimension_numbers = #tpu.dot_dimension_numbers<[1], [1], [0], [0], [0, 0, 1, 0], [], []>} : vector<64x8xf32>, vector<128x8xf32>, vector<64x128xf32> -> vector<64x128xf32>
    %c0_3 = arith.constant 0 : index
    %c0_4 = arith.constant 0 : index
    %3 = vector.load %arg3[%c0_3, %c0_4] : memref<64x1xf32, #tpu.memory_space<vmem>>, vector<64x1xf32>
    %4 = vector.broadcast %3 : vector<64x1xf32> to vector<64x128xf32>
    %5 = arith.addf %2, %4 : vector<64x128xf32>
    %cst_5 = arith.constant 0.000000e+00 : f32
    %6 = vector.broadcast %cst_5 : f32 to vector<64x128xf32>
    %7 = arith.maximumf %5, %6 : vector<64x128xf32>
    %c0_6 = arith.constant 0 : index
    %c0_7 = arith.constant 0 : index
    %8 = vector.load %arg4[%c0_6, %c0_7] : memref<8x64xf32, #tpu.memory_space<vmem>>, vector<8x64xf32>
    %cst_8 = arith.constant dense<0.000000e+00> : vector<8x128xf32>
    %9 = tpu.matmul %8, %7, %cst_8 {dimension_numbers = #tpu.dot_dimension_numbers<[1], [0], [0], [1], [0, 0, 1, 1], [], []>} : vector<8x64xf32>, vector<64x128xf32>, vector<8x128xf32> -> vector<8x128xf32>
    %10 = vector.extract_strided_slice %9 {offsets = [0, 0], sizes = [1, 128], strides = [1, 1]} : vector<8x128xf32> to vector<1x128xf32>
    %c0_9 = arith.constant 0 : index
    %c0_10 = arith.constant 0 : index
    %11 = vector.load %arg5[%c0_9, %c0_10] : memref<1x1xf32, #tpu.memory_space<vmem>>, vector<1x1xf32>
    %12 = vector.broadcast %11 : vector<1x1xf32> to vector<1x128xf32>
    %13 = arith.addf %10, %12 : vector<1x128xf32>
    %c0_11 = arith.constant 0 : index
    %c0_12 = arith.constant 0 : index
    %14 = vector.load %arg6[%c0_11, %c0_12] : memref<1x128xf32, #tpu.memory_space<vmem>>, vector<1x128xf32>
    tpu.vector_store %arg6[%c0_11, %c0_12], %13 {strides = array<i32>} : memref<1x128xf32, #tpu.memory_space<vmem>>, vector<1x128xf32>,
    return
  }
  func.func @transform_0(%arg0: i32) -> (i32, i32) {
    %c0_i32 = arith.constant 0 : i32
    %c0_i32_0 = arith.constant 0 : i32
    return %arg0, %c0_i32 : i32, i32
  }
  func.func @transform_1(%arg0: i32) -> (i32, i32) {
    %c0_i32 = arith.constant 0 : i32
    %c0_i32_0 = arith.constant 0 : i32
    %c0_i32_1 = arith.constant 0 : i32
    return %c0_i32, %c0_i32_0 : i32, i32
  }
  func.func @transform_2(%arg0: i32) -> (i32, i32) {
    %c0_i32 = arith.constant 0 : i32
    %c0_i32_0 = arith.constant 0 : i32
    %c0_i32_1 = arith.constant 0 : i32
    return %c0_i32, %c0_i32_0 : i32, i32
  }
  func.func @transform_3(%arg0: i32) -> (i32, i32) {
    %c0_i32 = arith.constant 0 : i32
    %c0_i32_0 = arith.constant 0 : i32
    %c0_i32_1 = arith.constant 0 : i32
    return %c0_i32, %c0_i32_0 : i32, i32
  }
  func.func @transform_4(%arg0: i32) -> (i32, i32) {
    %c0_i32 = arith.constant 0 : i32
    %c0_i32_0 = arith.constant 0 : i32
    %c0_i32_1 = arith.constant 0 : i32
    return %c0_i32, %c0_i32_0 : i32, i32
  }
  func.func @transform_5(%arg0: i32) -> (i32, i32) {
    %c0_i32 = arith.constant 0 : i32
    %c0_i32_0 = arith.constant 0 : i32
    return %c0_i32, %arg0 : i32, i32
  }
}

</mosaic_0001>

<bundles_post_ra>
// kernel: critic_forward.1
= control target key start
LH: loop header
LB: loop body
LE: loop exit
PB: predicated region body
PF: predicated region fallthrough
CT: control target
= control target key end

     0   :  { %s710_s0 = inlined_call_operand.vmem [shape: f32[2,8], index: 0, kind: input, shape index: {}]   ;;  %s711_s1 = inlined_call_operand.vmem [shape: f32[64,8], index: 1, kind: input, shape index: {}]   ;;  %s712_s2 = inlined_call_operand.vmem [shape: f32[64,1], index: 2, kind: input, shape index: {}]   ;;  %s713_s3 = inlined_call_operand.vmem [shape: f32[8,64], index: 3, kind: input, shape index: {}]   ;;  %s714_s4 = inlined_call_operand.<no memory space> [shape: f32[1,1], index: 4, kind: input, shape index: {}]   ;;  %s715_s5 = inlined_call_operand.hbm [shape: f32[1,2], index: 5, kind: output, shape index: {}]  }
   0x1   :  { %v10_v0 = vstv %s714_s4 }
   0x2   :  { %11 = vst [vmem:[#allocation2] sm:$0x1] %v10_v0 }
   0x3   :  { %v38_v1 = vld [vmem:[%s710_s0 + $0x78] sm:$0xff]  ;;  %vm95_vm0 = vcmask 64512   ;;  %v37_v2 = vld [vmem:[%s710_s0 + $0x70] sm:$0xff]  ;;  %v531_v3 = vmov 0   ;;  %v36_v4 = vld [vmem:[%s710_s0 + $0x68] sm:$0xff] }
   0x4   :  { %440 = vmatprep.subr.msk.mxu0 %vm95_vm0, %v38_v1  ;;  %507 = vset.pattern.permute.xlu0 %v531_v3  ;;  %v39_v5 = vld [vmem:[%s711_s1] sm:$0xff]  ;;  %v54_v7 = vld [vmem:[%s712_s2 + $0x38] sm:$0xff]  ;;  %v52_v8 = vld [vmem:[%s712_s2 + $0x28] sm:$0xff] }
   0x5   :  { %441 = vmatpush3.xpose.msk.msra.mxu0 %vm95_vm0, %v38_v1  ;;  %508 = vset.pattern.permute.xlu1 %v531_v3  ;;  %v35_v6 = vld [vmem:[%s710_s0 + $0x60] sm:$0xff]  ;;  %v53_v9 = vld [vmem:[%s712_s2 + $0x30] sm:$0xff] }
   0x6   :  { %442 = vmatprep.subr.msk.mxu0 %vm95_vm0, %v37_v2  ;;  %472 = vmatprep.mubr.msk.f32.mxu0 %vm95_vm0, %v39_v5  ;;  %v51_v10 = vld [vmem:[%s712_s2 + $0x20] sm:$0xff] }
   0x7   :  { %92 = vperm.xlu0 %507, %v54_v7   ;;  %82 = vperm.xlu1 %508, %v52_v8  }
   0x9   :  { %443 = vmatpush3.xpose.msk.msra.mxu0 %vm95_vm0, %v37_v2 }
   0xa   :  { %444 = vmatprep.subr.msk.mxu0 %vm95_vm0, %v36_v4 }
   0xd   :  { %445 = vmatpush3.xpose.msk.msra.mxu0 %vm95_vm0, %v36_v4 }
   0xe   :  { %446 = vmatprep.subr.msk.mxu0 %vm95_vm0, %v35_v6 }
   0xf   :  { %12 = vsyncpa [#allocation4], 0  ;;  %v34_v11 = vld [vmem:[%s710_s0 + $0x58] sm:$0xff]  ;;  %87 = vperm.xlu0 %507, %v53_v9   ;;  %77 = vperm.xlu1 %508, %v51_v10   ;;  %v49_v13 = vld [vmem:[%s712_s2 + $0x10] sm:$0xff]  ;;  %v532_v35 = vmov 0.0   ;;  %vm533_vm1 = vmmov 0   ;;  %v362_v5 = vlaneseq }
  0x10   :  { %v50_v12 = vld [vmem:[%s712_s2 + $0x18] sm:$0xff]  ;;  %v33_v14 = vld [vmem:[%s710_s0 + $0x50] sm:$0xff]  ;;  %v48_v15 = vld [vmem:[%s712_s2 + $0x8] sm:$0xff]  ;;  %484 = vmatprep.subr.mxu1 %v532_v35  ;;  %500 = vmatprep.mubr.msk.f32.mxu1 %vm533_vm1, %v532_v35  ;;  %vm282_vm2 = vcmask 523264   ;;  %s534_s29 = smov [#allocation3]  }
  0x11   :  { %447 = vmatpush3.xpose.msk.msra.mxu0 %vm95_vm0, %v35_v6  ;;  %v47_v16 = vld [vmem:[%s712_s2] sm:$0xff]  ;;  %v32_v17 = vld [vmem:[%s710_s0 + $0x48] sm:$0xff]  ;;  %v30_v20 = vld [vmem:[%s710_s0 + $0x38] sm:$0xff]  ;;  %v363_v6 = vshrl.u32 %v362_v5, 7  ;;  %s374_s30 = sshll.u32 %s534_s29, 4  ;;  %s375_s30 = int_to_ptr.vmem [resolvable:$true] %s374_s30 }
  0x12   :  { %448 = vmatprep.subr.msk.mxu0 %vm95_vm0, %v34_v11  ;;  %v356_v18 = vld [vmem:[#allocation2] sm:$0x1]  ;;  %v29_v21 = vld [vmem:[%s710_s0 + $0x30] sm:$0xff]  ;;  %v28_v22 = vld [vmem:[%s710_s0 + $0x28] sm:$0xff]  ;;  %s509_s6 = scalar_lea.vmem %s375_s30, 16  ;;  %s513_s7 = scalar_lea.vmem %s375_s30, 32 }
  0x13   :  { %72 = vperm.xlu0 %507, %v50_v12   ;;  %67 = vperm.xlu1 %508, %v49_v13   ;;  %v31_v19 = vld [vmem:[%s710_s0 + $0x40] sm:$0xff]  ;;  %v26_v24 = vld [vmem:[%s710_s0 + $0x18] sm:$0xff]  ;;  %v25_v25 = vld [vmem:[%s710_s0 + $0x10] sm:$0xff]  ;;  %v364_v7 = vsub.s32 0, %v363_v6  ;;  %p510_p0 = scmp.ne.s32.totalorder %s375_s30, %s509_s6  ;;  %p514_p1 = scmp.lt.s32.totalorder %s375_s30, %s375_s30 }
  0x14   :  { %v27_v23 = vld [vmem:[%s710_s0 + $0x20] sm:$0xff]  ;;  %v24_v26 = vld [vmem:[%s710_s0 + $0x8] sm:$0xff]  ;;  %v41_v29 = vld [vmem:[%s711_s1 + $0x10] sm:$0xff]  ;;  %p515_p2 = scmp.lt.s32.totalorder %s513_s7, %s509_s6 }
  0x15   :  { %449 = vmatpush3.xpose.msk.msra.mxu0 %vm95_vm0, %v34_v11  ;;  %v23_v27 = vld [vmem:[%s710_s0] sm:$0xff]  ;;  %v40_v28 = vld [vmem:[%s711_s1 + $0x8] sm:$0xff]  ;;  %v42_v30 = vld [vmem:[%s711_s1 + $0x18] sm:$0xff] }
  0x16   :  { %450 = vmatprep.subr.msk.mxu0 %vm95_vm0, %v33_v14  ;;  %v43_v31 = vld [vmem:[%s711_s1 + $0x20] sm:$0xff]  ;;  %v44_v32 = vld [vmem:[%s711_s1 + $0x28] sm:$0xff]  ;;  %v45_v33 = vld [vmem:[%s711_s1 + $0x30] sm:$0xff]  ;;  %p516_p3 = por %p515_p2, %p514_p1 }
  0x17   :  { %62 = vperm.xlu0 %507, %v48_v15   ;;  %57 = vperm.xlu1 %508, %v47_v16   ;;  %v46_v34 = vld [vmem:[%s711_s1 + $0x38] sm:$0xff]  ;;  %v281_v4 = vld [vmem:[%s713_s3] sm:$0xff] }
  0x18   :  { %p517_p4 = pnand %p516_p3, %p510_p0 }
  0x19   :  { %451 = vmatpush3.xpose.msk.msra.mxu0 %vm95_vm0, %v33_v14 }
  0x1a   :  { %452 = vmatprep.subr.msk.mxu0 %vm95_vm0, %v32_v17 }
  0x1b   :  { %359 = vperm.xlu0 %507, %v356_v18  }
  0x1d   :  { %453 = vmatpush3.xpose.msk.msra.mxu0 %vm95_vm0, %v32_v17 }
  0x1e   :  { %454 = vmatprep.subr.msk.mxu0 %vm95_vm0, %v31_v19 }
  0x21   :  { %455 = vmatpush3.xpose.msk.msra.mxu0 %vm95_vm0, %v31_v19 }
  0x22   :  { %456 = vmatprep.subr.msk.mxu0 %vm95_vm0, %v30_v20 }
  0x25   :  { %457 = vmatpush3.xpose.msk.msra.mxu0 %vm95_vm0, %v30_v20 }
  0x26   :  { %458 = vmatprep.subr.msk.mxu0 %vm95_vm0, %v29_v21 }
  0x29   :  { %459 = vmatpush3.xpose.msk.msra.mxu0 %vm95_vm0, %v29_v21 }
  0x2a   :  { %460 = vmatprep.subr.msk.mxu0 %vm95_vm0, %v28_v22 }
  0x2d   :  { %461 = vmatpush3.xpose.msk.msra.mxu0 %vm95_vm0, %v28_v22 }
  0x2e   :  { %462 = vmatprep.subr.msk.mxu0 %vm95_vm0, %v27_v23 }
  0x31   :  { %463 = vmatpush3.xpose.msk.msra.mxu0 %vm95_vm0, %v27_v23 }
  0x32   :  { %464 = vmatprep.subr.msk.mxu0 %vm95_vm0, %v26_v24 }
  0x35   :  { %465 = vmatpush3.xpose.msk.msra.mxu0 %vm95_vm0, %v26_v24 }
  0x36   :  { %466 = vmatprep.subr.msk.mxu0 %vm95_vm0, %v25_v25 }
  0x39   :  { %467 = vmatpush3.xpose.msk.msra.mxu0 %vm95_vm0, %v25_v25 }
  0x3a   :  { %468 = vmatprep.subr.msk.mxu0 %vm95_vm0, %v24_v26 }
  0x3d   :  { %469 = vmatpush3.xpose.msk.msra.mxu0 %vm95_vm0, %v24_v26 }
  0x3e   :  { %470 = vmatprep.subr.msk.mxu0 %vm95_vm0, %v23_v27 }
  0x41   :  { %471 = vmatpush3.xpose.msk.msra.mxu0 %vm95_vm0, %v23_v27 }
  0x44   :  { %473 = vmatmul.mubr.msk.f32.vlgmr.msra.gmra.mxu0 %vm95_vm0, %v40_v28 }
  0x45   :  { %475 = vmatprep.mubr.msk.f32.mxu0 %vm95_vm0, %v41_v29 }
  0x48   :  { %476 = vmatmul.mubr.msk.f32.gmra.mxu0 %vm95_vm0, %v42_v30 }
  0x49   :  { %478 = vmatprep.mubr.msk.f32.mxu0 %vm95_vm0, %v43_v31 }
  0x4c   :  { %479 = vmatmul.mubr.msk.f32.gmra.mxu0 %vm95_vm0, %v44_v32 }
  0x4d   :  { %481 = vmatprep.mubr.msk.f32.mxu0 %vm95_vm0, %v45_v33 }
  0x50   :  { %482 = vmatmul.mubr.msk.f32.gmra.mxu0 %vm95_vm0, %v46_v34 }
  0x82   :  { %v93_v37 = vpop.permute.xlu0 %92  ;;  %v83_v39 = vpop.permute.xlu1 %82 }
  0x8a   :  { %v88_v42 = vpop.permute.xlu0 %87  ;;  %v78_v44 = vpop.permute.xlu1 %77 }
  0x8e   :  { %v73_v48 = vpop.permute.xlu0 %72  ;;  %v68_v53 = vpop.permute.xlu1 %67 }
  0x92   :  { %v63_v58 = vpop.permute.xlu0 %62  ;;  %v58_v61 = vpop.permute.xlu1 %57 }
  0x96   :  { %v360_v8 = vpop.permute.xlu0 %359 }
  0x97   :  { %v365_v9 = vrot.slane %v360_v8, %v364_v7 }
 0x104   :  { %v474_v36 = vpop.f32.mrf.mxu0 }
 0x105   :  { %v240_v62 = vadd.f32 %v474_v36, %v63_v58 }
 0x106   :  { %v234_v38 = vpop.f32.mrf.mxu0 }
 0x107   :  { %v235_v0 = vadd.f32 %v234_v38, %v58_v61  ;;  %v274_v2 = vmax.f32 %v240_v62, 0.0 }
 0x108   :  { %v477_v40 = vpop.f32.mrf.mxu0 }
 0x109   :  { %v250_v56 = vadd.f32 %v477_v40, %v73_v48  ;;  %v273_v3 = vmax.f32 %v235_v0, 0.0 }
 0x10a   :  { %v244_v41 = vpop.f32.mrf.mxu0 }
 0x10b   :  { %v245_v59 = vadd.f32 %v244_v41, %v68_v53  ;;  %v276_v63 = vmax.f32 %v250_v56, 0.0 }
 0x10c   :  { %v480_v43 = vpop.f32.mrf.mxu0 }
 0x10d   :  { %v260_v50 = vadd.f32 %v480_v43, %v83_v39  ;;  %v275_v1 = vmax.f32 %v245_v59, 0.0 }
 0x10e   :  { %v254_v45 = vpop.f32.mrf.mxu0 }
 0x10f   :  { %v255_v54 = vadd.f32 %v254_v45, %v78_v44  ;;  %v278_v57 = vmax.f32 %v260_v50, 0.0 }
 0x110   :  { %v483_v46 = vpop.f32.mrf.mxu0 }
 0x111   :  { %v270_v47 = vadd.f32 %v483_v46, %v93_v37  ;;  %v277_v60 = vmax.f32 %v255_v54, 0.0 }
 0x112   :  { %v264_v49 = vpop.f32.mrf.mxu0 }
 0x113   :  { %v280_v51 = vmax.f32 %v270_v47, 0.0  ;;  %v265_v52 = vadd.f32 %v264_v49, %v88_v42 }
 0x115   :  { %v279_v55 = vmax.f32 %v265_v52, 0.0  ;;  %485 = vmatpush3.msra.mxu1 %v280_v51 }
 0x116   :  { %486 = vmatprep.subr.mxu1 %v532_v35 }
 0x117   :  { %487 = vmatpush3.msra.mxu1 %v279_v55 }
 0x118   :  { %488 = vmatprep.subr.mxu1 %v532_v35 }
 0x119   :  { %489 = vmatpush3.msra.mxu1 %v278_v57 }
 0x11a   :  { %490 = vmatprep.subr.mxu1 %v532_v35 }
 0x11b   :  { %491 = vmatpush3.msra.mxu1 %v277_v60 }
 0x11c   :  { %492 = vmatprep.subr.mxu1 %v532_v35 }
 0x11d   :  { %493 = vmatpush3.msra.mxu1 %v276_v63 }
 0x11e   :  { %494 = vmatprep.subr.mxu1 %v532_v35 }
 0x11f   :  { %495 = vmatpush3.msra.mxu1 %v275_v1 }
 0x120   :  { %496 = vmatprep.subr.mxu1 %v532_v35 }
 0x121   :  { %497 = vmatpush3.msra.mxu1 %v274_v2 }
 0x122   :  { %498 = vmatprep.subr.mxu1 %v532_v35 }
 0x123   :  { %499 = vmatpush3.msra.mxu1 %v273_v3 }
 0x124   :  { %501 = vmatmul.mubr.msk.f32.vlgmr.msra.gmra.mxu1 %vm282_vm2, %v281_v4 }
 0x1e4   :  { %v352_v10 = vpop.f32.mrf.mxu1 }
 0x1e5   :  { %v366_v11 = vadd.f32 %v365_v9, %v352_v10 }
 0x1e6   :  { %v502_v12 = vpop.f32.mrf.mxu1 }
 0x1e7   :  { %367 = vst [vmem:[#allocation3] sm:$0x1] %v366_v11 }
 0x1e8   :  { %520 = shalt.err (!%p517_p4)
}
 0x1e9   :  { %377 = dma.vmem_to_hbm [thread:$0]  %s375_s30, 16, %s715_s5, [#allocation4]  }
 0x1ea   :  { %529 = dma.done.wait [#allocation4], 16  }
 0x1eb   :  { %530 = vsyncadd [#allocation4], 4294967280 }
 0x1ec   :  { %381 = vsyncpa [#allocation4], 1 }

</bundles_post_ra>
